<compile_context>
chip_gen: v6e
topology: v6e:2x2x1
jax: 0.10.0
libtpu: 0.0.40
codegen_flags: <defaults>
</compile_context>

<pallas_src>
import math

import jax
import jax.numpy as jnp
from jax.experimental import pallas as pl
from jax.experimental.pallas import tpu as pltpu


def _round_up(x, m):
    return ((x + m - 1) // m) * m


def _linear_kernel(x_ref, w_ref, b_ref, o_ref, acc_ref):
    """One (TM, TK) x (TK, TN) MXU step with f32 accumulation.

    Grid = (row tiles [parallel], out tiles [parallel], K tiles [arbitrary]).
    """
    kk = pl.program_id(2)

    @pl.when(kk == 0)
    def _init():
        acc_ref[...] = jnp.zeros_like(acc_ref)

    acc_ref[...] += jnp.dot(
        x_ref[...], w_ref[...], preferred_element_type=jnp.float32
    )

    @pl.when(kk == pl.num_programs(2) - 1)
    def _finalize():
        # Bias add / epilogue kept in f32 (v5e VPU has no bf16 elementwise).
        o_ref[...] = (acc_ref[...] + b_ref[...]).astype(o_ref.dtype)


def prepare_sum_linear_params(weight, bias=None, *, compute_dtype=None):
    """One-time parameter prep (do at init time, NOT per forward call).

    Returns (wT, bias2, out_channels):
      wT    : (K, OUT_PAD) weight, transposed + lane-padded (+ optionally cast).
      bias2 : (1, OUT_PAD) f32 bias (zeros if bias is None).
    """
    out_c, k = weight.shape
    out_pad = _round_up(out_c, 128)          # lane-dense (unmasked) output stores
    if compute_dtype is None:
        compute_dtype = weight.dtype

    wT = weight.T                             # one-time OUTxK HBM transpose
    if out_pad != out_c:
        wT = jnp.pad(wT, ((0, 0), (0, out_pad - out_c)))
    wT = wT.astype(compute_dtype)

    if bias is None:
        b = jnp.zeros((out_pad,), jnp.float32)
    else:
        b = bias.astype(jnp.float32)
        if out_pad != out_c:
            b = jnp.pad(b, (0, out_pad - out_c))
    return wT, b.reshape(1, out_pad), out_c


def sum_linear_apply(x, wT, bias2, out_channels, *,
                     tm_max=1024, vmem_budget_bytes=12 << 20,
                     allow_xla_fallback=False):
    """y = x @ W^T + b, with (wT, bias2) from prepare_sum_linear_params."""
    n, k = x.shape
    k_w, out_pad = wT.shape
    assert k == k_w and out_pad % 128 == 0
    assert bias2.shape == (1, out_pad)

    out_dtype = x.dtype
    compute_dtype = wT.dtype
    if x.dtype != compute_dtype:
        x = x.astype(compute_dtype)

    if allow_xla_fallback and n * k * out_pad <= (1 << 16):
        # Launch-overhead-bound toy shapes: a single fused XLA dot is cheaper.
        y = jnp.dot(x, wT, preferred_element_type=jnp.float32) + bias2
        return y[:, :out_channels].astype(out_dtype)

    in_sz = jnp.dtype(compute_dtype).itemsize
    out_sz = jnp.dtype(out_dtype).itemsize

    # --- K tile (reduction axis, last in grid) -------------------------------
    if k % 128 == 0 and k > 512:
        tk = 512                      # lane-aligned K tiles
    else:
        tk = k                        # whole contraction dim in one block
        # TODO(synk): zero-pad K to a multiple of 128 for huge, unaligned in_channels.
    k_tiles = pl.cdiv(k, tk)

    # --- out-channel tile ----------------------------------------------------
    tn = min(out_pad, 512)            # multiple of 128 -> lane-dense stores
    o_tiles = pl.cdiv(out_pad, tn)

    # --- row tile: VMEM-budget and core-count aware --------------------------
    # Conservative double-buffer accounting; fits v5e's 16 MiB scoped default.
    fixed = 2 * tk * tn * in_sz + 2 * tn * 4
    per_row = 2 * tk * in_sz + 2 * tn * out_sz + tn * 4
    tm_vmem = max(16, (vmem_budget_bytes - fixed) // per_row)
    # >=8 row tiles at large N so both v7x TensorCores stay busy with pipeline
    # depth; 256+ row tiles keep ~85%+ of HBM roofline per measured data.
    tm_core = max(256, _round_up(pl.cdiv(n, 8), 16))
    tm_cap = max(16, min(tm_max, tm_vmem, tm_core))
    if n <= tm_cap:
        tm = n                               # single full-extent row block (always legal)
    else:
        tm = max(16, (tm_cap // 16) * 16)    # 16-aligned: legal for f32 and bf16
    m_tiles = pl.cdiv(n, tm)

    w_invariant = (o_tiles == 1 and k_tiles == 1)
    b_invariant = (o_tiles == 1)

    cost = pl.CostEstimate(
        flops=2 * n * k * out_pad,
        transcendentals=0,
        bytes_accessed=(n * k * in_sz * o_tiles
                        + k * out_pad * in_sz * (1 if w_invariant else m_tiles)
                        + out_pad * 4
                        + n * out_pad * out_sz),
    )

    def run(single_buffer_invariants):
        w_kwargs, b_kwargs = {}, {}
        if single_buffer_invariants:
            if w_invariant:
                w_kwargs = dict(pipeline_mode=pl.Buffered(1))
            if b_invariant:
                b_kwargs = dict(pipeline_mode=pl.Buffered(1))
        grid_spec = pltpu.PrefetchScalarGridSpec(
            num_scalar_prefetch=0,
            grid=(m_tiles, o_tiles, k_tiles),
            in_specs=[
                pl.BlockSpec((tm, tk), lambda i, j, kk: (i, kk)),
                pl.BlockSpec((tk, tn), lambda i, j, kk: (kk, j), **w_kwargs),
                pl.BlockSpec((1, tn), lambda i, j, kk: (0, j), **b_kwargs),
            ],
            out_specs=pl.BlockSpec((tm, tn), lambda i, j, kk: (i, j)),
            scratch_shapes=[pltpu.VMEM((tm, tn), jnp.float32)],
        )
        return pl.pallas_call(
            _linear_kernel,
            out_shape=jax.ShapeDtypeStruct((n, out_pad), out_dtype),
            grid_spec=grid_spec,
            compiler_params=pltpu.CompilerParams(
                dimension_semantics=("parallel", "parallel", "arbitrary"),
            ),
            cost_estimate=cost,
        )(x, wT, bias2)

    if w_invariant or b_invariant:
        try:
            y_pad = run(True)
        except Exception:
            # This Mosaic build rejects buffer_count=1; use default buffering.
            y_pad = run(False)
    else:
        y_pad = run(False)

    # TODO(synk): defer/fuse this lane slice into the consumer for small out_c.
    return y_pad[:, :out_channels]


def sum_linear_forward(x, weight, bias=None, *, compute_dtype=None, **kwargs):
    """Convenience wrapper: prepare params then apply (prefer preparing once)."""
    wT, bias2, out_c = prepare_sum_linear_params(
        weight, bias, compute_dtype=compute_dtype)
    return sum_linear_apply(x, wT, bias2, out_c, **kwargs)


def init_sum_linear_params(key, in_channels, out_channels):
    """Matches the module's reset_parameters defaults:
    weight ~ kaiming_uniform(fan=in_channels, a=sqrt(5)) => U(-1/sqrt(fan), 1/sqrt(fan))
    bias   ~ inits.uniform(in_channels, bias)            => U(-1/sqrt(fan), 1/sqrt(fan))
    """
    kw, kb = jax.random.split(key)
    bound = 1.0 / math.sqrt(in_channels)
    weight = jax.random.uniform(
        kw, (out_channels, in_channels), jnp.float32, -bound, bound)
    bias = jax.random.uniform(
        kb, (out_channels,), jnp.float32, -bound, bound)
    return weight, bias


if __name__ == "__main__":
    key = jax.random.PRNGKey(0)
    k_x, k_p = jax.random.split(key)

    N, IN_C, OUT_C = 8, 32, 16           # small shapes consistent with the module
    x = jax.random.normal(k_x, (N, IN_C), jnp.float32)
    weight, bias = init_sum_linear_params(k_p, IN_C, OUT_C)
    y_ref = x @ weight.T + bias

    # 1) f32 path, params prepared once (transpose + lane-pad at init time).
    wT32, b2_32, out_c = prepare_sum_linear_params(weight, bias)
    y = jax.block_until_ready(sum_linear_apply(x, wT32, b2_32, out_c))
    assert y.shape == (N, OUT_C) and y.dtype == jnp.float32
    assert jnp.allclose(y, y_ref, atol=1e-5, rtol=1e-5)

    # 2) larger, non-tile-aligned N: ragged last row tile handled by the cdiv
    #    grid (no wrapper-side row pad / row slice passes).
    N2 = 1000
    x2 = jax.random.normal(jax.random.PRNGKey(7), (N2, IN_C), jnp.float32)
    y2 = jax.block_until_ready(sum_linear_apply(x2, wT32, b2_32, out_c))
    assert y2.shape == (N2, OUT_C)
    assert jnp.allclose(y2, x2 @ weight.T + bias, atol=1e-4, rtol=1e-5)

    # 3) bf16 compute path (v6e/v7x mem-bound lever): bf16 x/W, f32 MXU
    #    accumulation, f32 bias add, f32 output.
    wT16, b2_16, _ = prepare_sum_linear_params(
        weight, bias, compute_dtype=jnp.bfloat16)
    N3 = 512
    x3 = jax.random.normal(jax.random.PRNGKey(11), (N3, IN_C), jnp.float32)
    y3 = jax.block_until_ready(sum_linear_apply(x3, wT16, b2_16, out_c))
    assert y3.shape == (N3, OUT_C) and y3.dtype == jnp.float32
    assert jnp.allclose(y3, x3 @ weight.T + bias, atol=8e-2, rtol=5e-2)

    print("KERNEL_OK")
</pallas_src>

<mosaic_0001>
module attributes {stable_mosaic.version = 11 : i64} {
  func.func @_linear_kernel(%arg0: i32, %arg1: i32, %arg2: i32, %arg3: memref<8x32xf32, #tpu.memory_space<vmem>>, %arg4: memref<32x128xf32, #tpu.memory_space<vmem>>, %arg5: memref<1x128xf32, #tpu.memory_space<vmem>>, %arg6: memref<8x128xf32, #tpu.memory_space<vmem>>, %arg7: memref<8x128xf32, #tpu.memory_space<vmem>>) attributes {dimension_semantics = [#tpu.dimension_semantics<parallel>, #tpu.dimension_semantics<parallel>, #tpu.dimension_semantics<arbitrary>], iteration_bounds = array<i64: 1, 1, 1>, scalar_prefetch = 0 : i64, scratch_operands = 1 : i64, tpu.core_type = #tpu.core_type<tc>, window_params = [{transform_indices = @transform_0, window_bounds = array<i64: 8, 32>}, {pipeline_mode = #tpu.pipeline_mode<synchronous>, transform_indices = @transform_1, window_bounds = array<i64: 32, 128>}, {pipeline_mode = #tpu.pipeline_mode<synchronous>, transform_indices = @transform_2, window_bounds = array<i64: 1, 128>}, {transform_indices = @transform_3, window_bounds = array<i64: 8, 128>}]} {
    %c0_i32 = arith.constant 0 : i32
    %0 = arith.cmpi eq, %arg2, %c0_i32 : i32
    %1 = arith.extui %0 : i1 to i32
    %c0_i32_0 = arith.constant 0 : i32
    %2 = arith.cmpi ne, %1, %c0_i32_0 : i32
    scf.if %2 {
      %cst_10 = arith.constant 0.000000e+00 : f32
      %12 = vector.broadcast %cst_10 : f32 to vector<8x128xf32>
      %c0_11 = arith.constant 0 : index
      %c0_12 = arith.constant 0 : index
      %13 = vector.load %arg7[%c0_11, %c0_12] : memref<8x128xf32, #tpu.memory_space<vmem>>, vector<8x128xf32>
      tpu.vector_store %arg7[%c0_11, %c0_12], %12 {strides = array<i32>} : memref<8x128xf32, #tpu.memory_space<vmem>>, vector<8x128xf32>,
    } else {
    }
    %c0 = arith.constant 0 : index
    %c0_1 = arith.constant 0 : index
    %3 = vector.load %arg7[%c0, %c0_1] : memref<8x128xf32, #tpu.memory_space<vmem>>, vector<8x128xf32>
    %c0_2 = arith.constant 0 : index
    %c0_3 = arith.constant 0 : index
    %4 = vector.load %arg3[%c0_2, %c0_3] : memref<8x32xf32, #tpu.memory_space<vmem>>, vector<8x32xf32>
    %c0_4 = arith.constant 0 : index
    %c0_5 = arith.constant 0 : index
    %5 = vector.load %arg4[%c0_4, %c0_5] : memref<32x128xf32, #tpu.memory_space<vmem>>, vector<32x128xf32>
    %cst = arith.constant dense<0.000000e+00> : vector<8x128xf32>
    %6 = tpu.matmul %4, %5, %cst {dimension_numbers = #tpu.dot_dimension_numbers<[1], [0], [0], [1], [0, 0, 1, 1], [], []>} : vector<8x32xf32>, vector<32x128xf32>, vector<8x128xf32> -> vector<8x128xf32>
    %7 = arith.addf %3, %6 : vector<8x128xf32>
    %c0_6 = arith.constant 0 : index
    %c0_7 = arith.constant 0 : index
    %8 = vector.load %arg7[%c0_6, %c0_7] : memref<8x128xf32, #tpu.memory_space<vmem>>, vector<8x128xf32>
    tpu.vector_store %arg7[%c0_6, %c0_7], %7 {strides = array<i32>} : memref<8x128xf32, #tpu.memory_space<vmem>>, vector<8x128xf32>,
    %c0_i32_8 = arith.constant 0 : i32
    %9 = arith.cmpi eq, %arg2, %c0_i32_8 : i32
    %10 = arith.extui %9 : i1 to i32
    %c0_i32_9 = arith.constant 0 : i32
    %11 = arith.cmpi ne, %10, %c0_i32_9 : i32
    scf.if %11 {
      %c0_10 = arith.constant 0 : index
      %c0_11 = arith.constant 0 : index
      %12 = vector.load %arg7[%c0_10, %c0_11] : memref<8x128xf32, #tpu.memory_space<vmem>>, vector<8x128xf32>
      %c0_12 = arith.constant 0 : index
      %c0_13 = arith.constant 0 : index
      %13 = vector.load %arg5[%c0_12, %c0_13] : memref<1x128xf32, #tpu.memory_space<vmem>>, vector<1x128xf32>
      %14 = vector.broadcast %13 : vector<1x128xf32> to vector<8x128xf32>
      %15 = arith.addf %12, %14 : vector<8x128xf32>
      %c0_14 = arith.constant 0 : index
      %c0_15 = arith.constant 0 : index
      %16 = vector.load %arg6[%c0_14, %c0_15] : memref<8x128xf32, #tpu.memory_space<vmem>>, vector<8x128xf32>
      tpu.vector_store %arg6[%c0_14, %c0_15], %15 {strides = array<i32>} : memref<8x128xf32, #tpu.memory_space<vmem>>, vector<8x128xf32>,
    } else {
    }
    return
  }
  func.func @transform_0(%arg0: i32, %arg1: i32, %arg2: i32) -> (i32, i32) {
    %c0_i32 = arith.constant 0 : i32
    return %arg0, %arg2 : i32, i32
  }
  func.func @transform_1(%arg0: i32, %arg1: i32, %arg2: i32) -> (i32, i32) {
    %c0_i32 = arith.constant 0 : i32
    return %arg2, %arg1 : i32, i32
  }
  func.func @transform_2(%arg0: i32, %arg1: i32, %arg2: i32) -> (i32, i32) {
    %c0_i32 = arith.constant 0 : i32
    %c0_i32_0 = arith.constant 0 : i32
    return %c0_i32, %arg1 : i32, i32
  }
  func.func @transform_3(%arg0: i32, %arg1: i32, %arg2: i32) -> (i32, i32) {
    %c0_i32 = arith.constant 0 : i32
    return %arg0, %arg1 : i32, i32
  }
}

module attributes {stable_mosaic.version = 11 : i64} {
  func.func @_linear_kernel(%arg0: i32, %arg1: i32, %arg2: i32, %arg3: memref<8x32xf32, #tpu.memory_space<vmem>>, %arg4: memref<32x128xf32, #tpu.memory_space<vmem>>, %arg5: memref<1x128xf32, #tpu.memory_space<vmem>>, %arg6: memref<8x128xf32, #tpu.memory_space<vmem>>, %arg7: memref<8x128xf32, #tpu.memory_space<vmem>>) attributes {dimension_semantics = [#tpu.dimension_semantics<parallel>, #tpu.dimension_semantics<parallel>, #tpu.dimension_semantics<arbitrary>], iteration_bounds = array<i64: 1, 1, 1>, scalar_prefetch = 0 : i64, scratch_operands = 1 : i64, tpu.core_type = #tpu.core_type<tc>, window_params = [{transform_indices = @transform_0, window_bounds = array<i64: 8, 32>}, {transform_indices = @transform_1, window_bounds = array<i64: 32, 128>}, {transform_indices = @transform_2, window_bounds = array<i64: 1, 128>}, {transform_indices = @transform_3, window_bounds = array<i64: 8, 128>}]} {
    %c0_i32 = arith.constant 0 : i32
    %0 = arith.cmpi eq, %arg2, %c0_i32 : i32
    %1 = arith.extui %0 : i1 to i32
    %c0_i32_0 = arith.constant 0 : i32
    %2 = arith.cmpi ne, %1, %c0_i32_0 : i32
    scf.if %2 {
      %cst_10 = arith.constant 0.000000e+00 : f32
      %12 = vector.broadcast %cst_10 : f32 to vector<8x128xf32>
      %c0_11 = arith.constant 0 : index
      %c0_12 = arith.constant 0 : index
      %13 = vector.load %arg7[%c0_11, %c0_12] : memref<8x128xf32, #tpu.memory_space<vmem>>, vector<8x128xf32>
      tpu.vector_store %arg7[%c0_11, %c0_12], %12 {strides = array<i32>} : memref<8x128xf32, #tpu.memory_space<vmem>>, vector<8x128xf32>,
    } else {
    }
    %c0 = arith.constant 0 : index
    %c0_1 = arith.constant 0 : index
    %3 = vector.load %arg7[%c0, %c0_1] : memref<8x128xf32, #tpu.memory_space<vmem>>, vector<8x128xf32>
    %c0_2 = arith.constant 0 : index
    %c0_3 = arith.constant 0 : index
    %4 = vector.load %arg3[%c0_2, %c0_3] : memref<8x32xf32, #tpu.memory_space<vmem>>, vector<8x32xf32>
    %c0_4 = arith.constant 0 : index
    %c0_5 = arith.constant 0 : index
    %5 = vector.load %arg4[%c0_4, %c0_5] : memref<32x128xf32, #tpu.memory_space<vmem>>, vector<32x128xf32>
    %cst = arith.constant dense<0.000000e+00> : vector<8x128xf32>
    %6 = tpu.matmul %4, %5, %cst {dimension_numbers = #tpu.dot_dimension_numbers<[1], [0], [0], [1], [0, 0, 1, 1], [], []>} : vector<8x32xf32>, vector<32x128xf32>, vector<8x128xf32> -> vector<8x128xf32>
    %7 = arith.addf %3, %6 : vector<8x128xf32>
    %c0_6 = arith.constant 0 : index
    %c0_7 = arith.constant 0 : index
    %8 = vector.load %arg7[%c0_6, %c0_7] : memref<8x128xf32, #tpu.memory_space<vmem>>, vector<8x128xf32>
    tpu.vector_store %arg7[%c0_6, %c0_7], %7 {strides = array<i32>} : memref<8x128xf32, #tpu.memory_space<vmem>>, vector<8x128xf32>,
    %c0_i32_8 = arith.constant 0 : i32
    %9 = arith.cmpi eq, %arg2, %c0_i32_8 : i32
    %10 = arith.extui %9 : i1 to i32
    %c0_i32_9 = arith.constant 0 : i32
    %11 = arith.cmpi ne, %10, %c0_i32_9 : i32
    scf.if %11 {
      %c0_10 = arith.constant 0 : index
      %c0_11 = arith.constant 0 : index
      %12 = vector.load %arg7[%c0_10, %c0_11] : memref<8x128xf32, #tpu.memory_space<vmem>>, vector<8x128xf32>
      %c0_12 = arith.constant 0 : index
      %c0_13 = arith.constant 0 : index
      %13 = vector.load %arg5[%c0_12, %c0_13] : memref<1x128xf32, #tpu.memory_space<vmem>>, vector<1x128xf32>
      %14 = vector.broadcast %13 : vector<1x128xf32> to vector<8x128xf32>
      %15 = arith.addf %12, %14 : vector<8x128xf32>
      %c0_14 = arith.constant 0 : index
      %c0_15 = arith.constant 0 : index
      %16 = vector.load %arg6[%c0_14, %c0_15] : memref<8x128xf32, #tpu.memory_space<vmem>>, vector<8x128xf32>
      tpu.vector_store %arg6[%c0_14, %c0_15], %15 {strides = array<i32>} : memref<8x128xf32, #tpu.memory_space<vmem>>, vector<8x128xf32>,
    } else {
    }
    return
  }
  func.func @transform_0(%arg0: i32, %arg1: i32, %arg2: i32) -> (i32, i32) {
    %c0_i32 = arith.constant 0 : i32
    return %arg0, %arg2 : i32, i32
  }
  func.func @transform_1(%arg0: i32, %arg1: i32, %arg2: i32) -> (i32, i32) {
    %c0_i32 = arith.constant 0 : i32
    return %arg2, %arg1 : i32, i32
  }
  func.func @transform_2(%arg0: i32, %arg1: i32, %arg2: i32) -> (i32, i32) {
    %c0_i32 = arith.constant 0 : i32
    %c0_i32_0 = arith.constant 0 : i32
    return %c0_i32, %arg1 : i32, i32
  }
  func.func @transform_3(%arg0: i32, %arg1: i32, %arg2: i32) -> (i32, i32) {
    %c0_i32 = arith.constant 0 : i32
    return %arg0, %arg1 : i32, i32
  }
}

</mosaic_0001>

<bundles_post_ra>
// kernel: tpu_custom_call.1
= control target key start
LH: loop header
LB: loop body
LE: loop exit
PB: predicated region body
PF: predicated region fallthrough
CT: control target
= control target key end

     0   :  { %8 = vsyncpa [#allocation4], 0  ;;  %s287_s0 = inlined_call_operand.hbm [shape: f32[8,32], index: 0, kind: input, shape index: {}]   ;;  %s288_s1 = inlined_call_operand.hbm [shape: f32[32,128], index: 1, kind: input, shape index: {}]   ;;  %s289_s2 = inlined_call_operand.vmem [shape: f32[1,128], index: 2, kind: input, shape index: {}]   ;;  %s290_s3 = inlined_call_operand.hbm [shape: f32[8,128], index: 3, kind: output, shape index: {}]  }
   0x1   :  { %9 = vsyncpa [#allocation7], 0 }
   0x2   :  { %10 = vsyncpa [#allocation5], 0  ;;  %s248_s12 = smov [#allocation3]   ;;  %s249_s14 = smov [#allocation6]  }
   0x3   :  { %s17_s13 = sshll.u32 %s248_s12, 4  ;;  %s26_s15 = sshll.u32 %s249_s14, 4  ;;  %s18_s13 = int_to_ptr.vmem [resolvable:$true] %s17_s13  ;;  %s27_s15 = int_to_ptr.vmem [resolvable:$true] %s26_s15 }
   0x4   :  { %s190_s16 = scalar_lea.vmem %s18_s13, 128  ;;  %p195_p1 = scmp.lt.s32.totalorder %s18_s13, %s18_s13 }
   0x5   :  { %p191_p0 = scmp.ne.s32.totalorder %s18_s13, %s190_s16  ;;  %p196_p2 = scmp.lt.s32.totalorder %s190_s16, %s190_s16 }
   0x7   :  { %p197_p3 = por %p196_p2, %p195_p1 }
   0x9   :  { %p198_p4 = pnand %p197_p3, %p191_p0 }
   0xb   :  { %201 = shalt.err (!%p198_p4)
}
   0xc   :  { %20 = dma.hbm_to_vmem [thread:$0]  %s287_s0, 128, %s18_s13, [#allocation4]  }
   0xd   :  { %s210_s19 = scalar_lea.vmem %s27_s15, 512  ;;  %p215_p6 = scmp.lt.s32.totalorder %s27_s15, %s27_s15 }
   0xe   :  { %p211_p5 = scmp.ne.s32.totalorder %s27_s15, %s210_s19  ;;  %p216_p7 = scmp.lt.s32.totalorder %s210_s19, %s210_s19 }
  0x10   :  { %p217_p8 = por %p216_p7, %p215_p6 }
  0x12   :  { %p218_p9 = pnand %p217_p8, %p211_p5 }
  0x14   :  { %221 = shalt.err (!%p218_p9)
}
  0x15   :  { %s250_s20 = smov 128   ;;  %s251_s21 = smov 8  }
  0x16   :  { %32 = dma.hbm_to_vmem [thread:$0]  %s288_s1, 512, %s27_s15, [#allocation7], %s250_s20, %s250_s20, %s251_s21  }
  0x17   :  { %242 = dma.done.wait [#allocation4], 128  }
  0x18   :  { %243 = vsyncadd [#allocation4], 4294967168 }
  0x19   :  { %244 = dma.done.wait [#allocation7], 512  }
  0x1a   :  { %245 = vsyncadd [#allocation7], 4294966784  ;;  %v252_v0 = vmov 0.0   ;;  %vm253_vm0 = vmmov 0   ;;  %v51_v1 = vld [vmem:[#allocation6 + $0x18] sm:$0xff]  ;;  %v50_v2 = vld [vmem:[#allocation6 + $0x10] sm:$0xff] }
  0x1b   :  { %164 = vmatprep.subr.mxu0 %v252_v0  ;;  %172 = vmatprep.mubr.msk.f32.mxu0 %vm253_vm0, %v252_v0  ;;  %v49_v3 = vld [vmem:[#allocation6 + $0x8] sm:$0xff]  ;;  %v48_v4 = vld [vmem:[#allocation6] sm:$0xff]  ;;  %v47_v5 = vld [vmem:[#allocation3] sm:$0xff]  ;;  %vm52_vm1 = vcmask 261120   ;;  %s254_s24 = smov [#allocation8]  }
  0x1c   :  { %165 = vmatpush3.msra.mxu0 %v51_v1  ;;  %v158_v6 = vld [vmem:[%s289_s2] ss:$0 sm:$0xff]  ;;  %s147_s25 = sshll.u32 %s254_s24, 4  ;;  %s148_s25 = int_to_ptr.vmem [resolvable:$true] %s147_s25 }
  0x1d   :  { %166 = vmatprep.subr.mxu0 %v252_v0  ;;  %s222_s26 = scalar_lea.vmem %s148_s25, 128  ;;  %p227_p11 = scmp.lt.s32.totalorder %s148_s25, %s148_s25 }
  0x1e   :  { %167 = vmatpush3.msra.mxu0 %v50_v2  ;;  %p223_p10 = scmp.ne.s32.totalorder %s148_s25, %s222_s26  ;;  %p228_p12 = scmp.lt.s32.totalorder %s222_s26, %s222_s26 }
  0x1f   :  { %168 = vmatprep.subr.mxu0 %v252_v0 }
  0x20   :  { %169 = vmatpush3.msra.mxu0 %v49_v3  ;;  %p229_p13 = por %p228_p12, %p227_p11 }
  0x21   :  { %170 = vmatprep.subr.mxu0 %v252_v0 }
  0x22   :  { %171 = vmatpush3.msra.mxu0 %v48_v4  ;;  %p230_p0 = pnand %p229_p13, %p223_p10 }
  0x23   :  { %173 = vmatmul.mubr.msk.f32.vlgmr.msra.gmra.mxu0 %vm52_vm1, %v47_v5 }
  0xe3   :  { %v122_v7 = vpop.f32.mrf.mxu0 }
  0xe4   :  { %v139_v8 = vadd.f32 %v158_v6, %v122_v7 }
  0xe5   :  { %v174_v9 = vpop.f32.mrf.mxu0 }
  0xe6   :  { %140 = vst [vmem:[#allocation8] sm:$0xff] %v139_v8 }
  0xe7   :  { %233 = shalt.err (!%p230_p0)
}
  0xe8   :  { %150 = dma.vmem_to_hbm [thread:$0]  %s148_s25, 128, %s290_s3, [#allocation5]  }
  0xe9   :  { %246 = dma.done.wait [#allocation5], 128  }
  0xea   :  { %247 = vsyncadd [#allocation5], 4294967168 }
  0xeb   :  { %154 = vsyncpa [#allocation4], 1 }
  0xec   :  { %155 = vsyncpa [#allocation7], 1 }
  0xed   :  { %156 = vsyncpa [#allocation5], 1 }

// kernel: tpu_custom_call.1
= control target key start
LH: loop header
LB: loop body
LE: loop exit
PB: predicated region body
PF: predicated region fallthrough
CT: control target
= control target key end

     0   :  { %8 = vsyncpa [#allocation4], 0  ;;  %s287_s0 = inlined_call_operand.hbm [shape: f32[8,32], index: 0, kind: input, shape index: {}]   ;;  %s288_s1 = inlined_call_operand.hbm [shape: f32[32,128], index: 1, kind: input, shape index: {}]   ;;  %s289_s2 = inlined_call_operand.vmem [shape: f32[1,128], index: 2, kind: input, shape index: {}]   ;;  %s290_s3 = inlined_call_operand.hbm [shape: f32[8,128], index: 3, kind: output, shape index: {}]  }
   0x1   :  { %9 = vsyncpa [#allocation7], 0 }
   0x2   :  { %10 = vsyncpa [#allocation5], 0  ;;  %s248_s12 = smov [#allocation3]   ;;  %s249_s14 = smov [#allocation6]  }
   0x3   :  { %s17_s13 = sshll.u32 %s248_s12, 4  ;;  %s26_s15 = sshll.u32 %s249_s14, 4  ;;  %s18_s13 = int_to_ptr.vmem [resolvable:$true] %s17_s13  ;;  %s27_s15 = int_to_ptr.vmem [resolvable:$true] %s26_s15 }
   0x4   :  { %s190_s16 = scalar_lea.vmem %s18_s13, 128  ;;  %p195_p1 = scmp.lt.s32.totalorder %s18_s13, %s18_s13 }
   0x5   :  { %p191_p0 = scmp.ne.s32.totalorder %s18_s13, %s190_s16  ;;  %p196_p2 = scmp.lt.s32.totalorder %s190_s16, %s190_s16 }
   0x7   :  { %p197_p3 = por %p196_p2, %p195_p1 }
   0x9   :  { %p198_p4 = pnand %p197_p3, %p191_p0 }
   0xb   :  { %201 = shalt.err (!%p198_p4)
}
   0xc   :  { %20 = dma.hbm_to_vmem [thread:$0]  %s287_s0, 128, %s18_s13, [#allocation4]  }
   0xd   :  { %s210_s19 = scalar_lea.vmem %s27_s15, 512  ;;  %p215_p6 = scmp.lt.s32.totalorder %s27_s15, %s27_s15 }
   0xe   :  { %p211_p5 = scmp.ne.s32.totalorder %s27_s15, %s210_s19  ;;  %p216_p7 = scmp.lt.s32.totalorder %s210_s19, %s210_s19 }
  0x10   :  { %p217_p8 = por %p216_p7, %p215_p6 }
  0x12   :  { %p218_p9 = pnand %p217_p8, %p211_p5 }
  0x14   :  { %221 = shalt.err (!%p218_p9)
}
  0x15   :  { %s250_s20 = smov 128   ;;  %s251_s21 = smov 8  }
  0x16   :  { %32 = dma.hbm_to_vmem [thread:$0]  %s288_s1, 512, %s27_s15, [#allocation7], %s250_s20, %s250_s20, %s251_s21  }
  0x17   :  { %242 = dma.done.wait [#allocation4], 128  }
  0x18   :  { %243 = vsyncadd [#allocation4], 4294967168 }
  0x19   :  { %244 = dma.done.wait [#allocation7], 512  }
  0x1a   :  { %245 = vsyncadd [#allocation7], 4294966784  ;;  %v252_v0 = vmov 0.0   ;;  %vm253_vm0 = vmmov 0   ;;  %v51_v1 = vld [vmem:[#allocation6 + $0x18] sm:$0xff]  ;;  %v50_v2 = vld [vmem:[#allocation6 + $0x10] sm:$0xff] }
  0x1b   :  { %164 = vmatprep.subr.mxu0 %v252_v0  ;;  %172 = vmatprep.mubr.msk.f32.mxu0 %vm253_vm0, %v252_v0  ;;  %v49_v3 = vld [vmem:[#allocation6 + $0x8] sm:$0xff]  ;;  %v48_v4 = vld [vmem:[#allocation6] sm:$0xff]  ;;  %v47_v5 = vld [vmem:[#allocation3] sm:$0xff]  ;;  %vm52_vm1 = vcmask 261120   ;;  %s254_s24 = smov [#allocation8]  }
  0x1c   :  { %165 = vmatpush3.msra.mxu0 %v51_v1  ;;  %v158_v6 = vld [vmem:[%s289_s2] ss:$0 sm:$0xff]  ;;  %s147_s25 = sshll.u32 %s254_s24, 4  ;;  %s148_s25 = int_to_ptr.vmem [resolvable:$true] %s147_s25 }
  0x1d   :  { %166 = vmatprep.subr.mxu0 %v252_v0  ;;  %s222_s26 = scalar_lea.vmem %s148_s25, 128  ;;  %p227_p11 = scmp.lt.s32.totalorder %s148_s25, %s148_s25 }
  0x1e   :  { %167 = vmatpush3.msra.mxu0 %v50_v2  ;;  %p223_p10 = scmp.ne.s32.totalorder %s148_s25, %s222_s26  ;;  %p228_p12 = scmp.lt.s32.totalorder %s222_s26, %s222_s26 }
  0x1f   :  { %168 = vmatprep.subr.mxu0 %v252_v0 }
  0x20   :  { %169 = vmatpush3.msra.mxu0 %v49_v3  ;;  %p229_p13 = por %p228_p12, %p227_p11 }
  0x21   :  { %170 = vmatprep.subr.mxu0 %v252_v0 }
  0x22   :  { %171 = vmatpush3.msra.mxu0 %v48_v4  ;;  %p230_p0 = pnand %p229_p13, %p223_p10 }
  0x23   :  { %173 = vmatmul.mubr.msk.f32.vlgmr.msra.gmra.mxu0 %vm52_vm1, %v47_v5 }
  0xe3   :  { %v122_v7 = vpop.f32.mrf.mxu0 }
  0xe4   :  { %v139_v8 = vadd.f32 %v158_v6, %v122_v7 }
  0xe5   :  { %v174_v9 = vpop.f32.mrf.mxu0 }
  0xe6   :  { %140 = vst [vmem:[#allocation8] sm:$0xff] %v139_v8 }
  0xe7   :  { %233 = shalt.err (!%p230_p0)
}
  0xe8   :  { %150 = dma.vmem_to_hbm [thread:$0]  %s148_s25, 128, %s290_s3, [#allocation5]  }
  0xe9   :  { %246 = dma.done.wait [#allocation5], 128  }
  0xea   :  { %247 = vsyncadd [#allocation5], 4294967168 }
  0xeb   :  { %154 = vsyncpa [#allocation4], 1 }
  0xec   :  { %155 = vsyncpa [#allocation7], 1 }
  0xed   :  { %156 = vsyncpa [#allocation5], 1 }

</bundles_post_ra>
